<compile_context>
chip_gen: v6e
topology: v6e:2x2x1
jax: 0.10.0
libtpu: 0.0.40
codegen_flags: <defaults>
</compile_context>

<pallas_src>
import functools

import jax
import jax.numpy as jnp
import numpy as np
from jax.experimental import pallas as pl
from jax.experimental.pallas import tpu as pltpu


def _cross_attn_kernel(x_ref, ctx_ref, wqk_ref, wvo_ref, bo_ref, out_ref, *, scale):
    # x_ref  : (B, N, CH)   ctx_ref: (B, L, CC)
    # wqk_ref: (H, CH, CC)  wvo_ref: (H, CC, CH)   bo_ref: (1, CH)
    # out_ref: (B, N, CH)
    B, N, CH = x_ref.shape
    _, L, CC = ctx_ref.shape
    H = wqk_ref.shape[0]
    cdt = x_ref.dtype               # native compute dtype (bf16 in production, f32 here)

    x = x_ref[...]                  # (B, N, CH)
    ctx = ctx_ref[...]              # (B, L, CC)
    x2 = x.reshape(B * N, CH)       # merge leading dims; lane (last) dim unchanged
    c2 = ctx.reshape(B * L, CC)

    # Residual + output bias, accumulated in f32.
    y = x.astype(jnp.float32) + bo_ref[...].astype(jnp.float32)      # (B, N, CH)

    # Static unroll over heads (H is small).  Each iteration: three MXU matmuls
    # plus a tiny f32 softmax.  Head-dependent weights are selected with a
    # static leading-axis index (no lane slicing).
    for h in range(H):
        # x @ (Wq_h Wk_h^T): plain 2-D matmul, f32 accumulation.
        xw = jnp.dot(x2, wqk_ref[h],
                     preferred_element_type=jnp.float32)             # (B*N, CC)
        xw = xw.reshape(B, N, CC).astype(cdt)

        # Scores s_h[b] = scale * xw[b] @ ctx[b]^T: batched matmul contracting
        # the last dims (no explicit transpose).
        s = scale * jnp.einsum('bnk,blk->bnl', xw, ctx,
                               preferred_element_type=jnp.float32)   # (B, N, L)

        # f32 softmax; exact normalization applied to p before the PV matmul.
        s = s - jnp.max(s, axis=-1, keepdims=True)
        p = jnp.exp(s)
        p = p / jnp.sum(p, axis=-1, keepdims=True)                   # (B, N, L)

        # ctx @ (Wv_h Wo_h): value + output projections folded into one matmul.
        vo = jnp.dot(c2, wvo_ref[h],
                     preferred_element_type=jnp.float32)             # (B*L, CH)
        vo = vo.reshape(B, L, CH).astype(cdt)

        # p_h @ vo_h, accumulated over heads in f32.
        y = y + jnp.einsum('bnl,blk->bnk', p.astype(cdt), vo,
                           preferred_element_type=jnp.float32)       # (B, N, CH)

    out_ref[...] = y.astype(out_ref.dtype)


def prepare_cross_attention_weights(wq, wk, wv, wo, *, num_head, ch_head):
    """One-time weight fold.  Call at model-setup time, NOT per forward call.

    Splits the fused projection weights per head (matching the PyTorch
    reshape(-1, num_head, ch_head) convention) and folds the head dimension out
    of the data path:
        wqk[h] = Wq_h @ Wk_h^T  -> (CH, CC)
        wvo[h] = Wv_h @ Wo_h    -> (CC, CH)
    """
    CH, HD = wq.shape
    CC = wk.shape[0]
    CHo = wo.shape[1]
    assert HD == num_head * ch_head
    wq3 = wq.reshape(CH, num_head, ch_head).transpose(1, 0, 2)    # (H, CH, D)
    wk3 = wk.reshape(CC, num_head, ch_head).transpose(1, 0, 2)    # (H, CC, D)
    wv3 = wv.reshape(CC, num_head, ch_head).transpose(1, 0, 2)    # (H, CC, D)
    wo3 = wo.reshape(num_head, ch_head, CHo)                      # (H, D, CH)
    wqk = jnp.einsum('hcd,hkd->hck', wq3, wk3)                    # (H, CH, CC)
    wvo = jnp.einsum('hcd,hdk->hck', wv3, wo3)                    # (H, CC, CH)
    return wqk, wvo


def cross_attention(x, context, wqk, wvo, bo, *, ch_head):
    """Forward pass.  `wqk` / `wvo` come from prepare_cross_attention_weights."""
    B, N, CH = x.shape
    _, L, CC = context.shape
    H = wqk.shape[0]
    assert wqk.shape == (H, CH, CC) and wvo.shape == (H, CC, CH)
    assert bo.shape == (1, CH)
    scale = float(ch_head) ** (-0.5)

    kernel = functools.partial(_cross_attn_kernel, scale=scale)
    vmem = lambda: pl.BlockSpec(memory_space=pltpu.MemorySpace.VMEM)
    return pl.pallas_call(
        kernel,
        out_shape=jax.ShapeDtypeStruct((B, N, CH), x.dtype),
        # Single invocation, no grid: every operand fits in VMEM many times
        # over, so there is nothing to pipeline.  Whole arrays land in VMEM.
        in_specs=[vmem(), vmem(), vmem(), vmem(), vmem()],
        out_specs=vmem(),
    )(x, context, wqk, wvo, bo)


def ref_cross_attention(x, ctx, wq, wk, wv, wo, bo, *, num_head, ch_head):
    """Pure-JAX reference mirroring the PyTorch einsum semantics."""
    scale = float(ch_head) ** (-0.5)
    B, N, _ = x.shape
    L = ctx.shape[1]
    HD = num_head * ch_head
    q = (x @ wq).reshape(B, N, num_head, ch_head)
    k = (ctx @ wk).reshape(B, L, num_head, ch_head)
    v = (ctx @ wv).reshape(B, L, num_head, ch_head)
    s = scale * jnp.einsum('bqnh,bknh->bnqk', q, k)            # 'qnh,knh->nqk'
    p = jax.nn.softmax(s, axis=-1)
    o = jnp.einsum('bnqk,bknh->bqnh', p, v).reshape(B, N, HD)  # 'nqv,vnh->qnh'
    return (o @ wo + bo) + x


if __name__ == "__main__":
    # Small shapes consistent with the module's forward.
    B, N, CH = 2, 16, 32          # batch, points-per-batch, feature channels
    L, CC = 8, 48                 # context seq len, context channels
    NUM_HEAD, CH_HEAD = 2, 64     # heads, head dim
    HD = NUM_HEAD * CH_HEAD

    key = jax.random.PRNGKey(0)
    kx, kc, k1, k2, k3, k4, k5 = jax.random.split(key, 7)

    x = jax.random.normal(kx, (B, N, CH), dtype=jnp.float32)
    context = jax.random.normal(kc, (B, L, CC), dtype=jnp.float32)

    # Deterministic synthetic parameters (no checkpoint load).
    wq = 0.05 * jax.random.normal(k1, (CH, HD), dtype=jnp.float32)   # to_q (1x1 conv, no bias)
    wk = 0.05 * jax.random.normal(k2, (CC, HD), dtype=jnp.float32)   # to_k (Linear, no bias)
    wv = 0.05 * jax.random.normal(k3, (CC, HD), dtype=jnp.float32)   # to_v (Linear, no bias)
    wo = 0.05 * jax.random.normal(k4, (HD, CH), dtype=jnp.float32)   # to_out weight
    bo = 0.05 * jax.random.normal(k5, (1, CH), dtype=jnp.float32)    # to_out bias

    # One-time weight fold (model-setup time, outside the step function).
    wqk, wvo = prepare_cross_attention_weights(
        wq, wk, wv, wo, num_head=NUM_HEAD, ch_head=CH_HEAD)
    wqk, wvo = jax.block_until_ready((wqk, wvo))

    out = cross_attention(x, context, wqk, wvo, bo, ch_head=CH_HEAD)
    out = jax.block_until_ready(out)

    ref = ref_cross_attention(x, context, wq, wk, wv, wo, bo,
                              num_head=NUM_HEAD, ch_head=CH_HEAD)
    ref = jax.block_until_ready(ref)

    np.testing.assert_allclose(np.asarray(out), np.asarray(ref),
                               rtol=2e-3, atol=2e-3)
    print("KERNEL_OK")
</pallas_src>

<mosaic_0001>
module attributes {stable_mosaic.version = 11 : i64} {
  func.func @_cross_attn_kernel(%arg0: memref<2x16x32xf32, #tpu.memory_space<vmem>>, %arg1: memref<2x8x48xf32, #tpu.memory_space<vmem>>, %arg2: memref<2x32x48xf32, #tpu.memory_space<vmem>>, %arg3: memref<2x48x32xf32, #tpu.memory_space<vmem>>, %arg4: memref<1x32xf32, #tpu.memory_space<vmem>>, %arg5: memref<2x16x32xf32, #tpu.memory_space<vmem>>) attributes {dimension_semantics = [], scalar_prefetch = 0 : i64, scratch_operands = 0 : i64, tpu.core_type = #tpu.core_type<tc>} {
    %c0 = arith.constant 0 : index
    %c0_0 = arith.constant 0 : index
    %c0_1 = arith.constant 0 : index
    %0 = vector.load %arg0[%c0, %c0_0, %c0_1] : memref<2x16x32xf32, #tpu.memory_space<vmem>>, vector<2x16x32xf32>
    %c0_2 = arith.constant 0 : index
    %c0_3 = arith.constant 0 : index
    %c0_4 = arith.constant 0 : index
    %1 = vector.load %arg1[%c0_2, %c0_3, %c0_4] : memref<2x8x48xf32, #tpu.memory_space<vmem>>, vector<2x8x48xf32>
    %2 = vector.shape_cast %0 : vector<2x16x32xf32> to vector<32x32xf32>
    %3 = vector.shape_cast %1 : vector<2x8x48xf32> to vector<16x48xf32>
    %c0_5 = arith.constant 0 : index
    %c0_6 = arith.constant 0 : index
    %4 = vector.load %arg4[%c0_5, %c0_6] : memref<1x32xf32, #tpu.memory_space<vmem>>, vector<1x32xf32>
    %5 = vector.shape_cast %4 : vector<1x32xf32> to vector<1x1x32xf32>
    %6 = vector.broadcast %5 : vector<1x1x32xf32> to vector<2x16x32xf32>
    %7 = arith.addf %0, %6 : vector<2x16x32xf32>
    %c0_7 = arith.constant 0 : index
    %c0_8 = arith.constant 0 : index
    %c0_9 = arith.constant 0 : index
    %8 = vector.load %arg2[%c0_7, %c0_8, %c0_9] : memref<2x32x48xf32, #tpu.memory_space<vmem>>, vector<1x32x48xf32>
    %9 = vector.shape_cast %8 : vector<1x32x48xf32> to vector<32x48xf32>
    %cst = arith.constant dense<0.000000e+00> : vector<32x48xf32>
    %10 = tpu.matmul %2, %9, %cst {dimension_numbers = #tpu.dot_dimension_numbers<[1], [0], [0], [1], [0, 0, 1, 1], [], []>} : vector<32x32xf32>, vector<32x48xf32>, vector<32x48xf32> -> vector<32x48xf32>
    %11 = vector.shape_cast %10 : vector<32x48xf32> to vector<2x16x48xf32>
    "tpu.trace_start"() <{level = 10 : i32, message = "bnk,blk->bnl"}> : () -> ()
    %cst_10 = arith.constant dense<0.000000e+00> : vector<2x16x8xf32>
    %12 = tpu.matmul %11, %1, %cst_10 {dimension_numbers = #tpu.dot_dimension_numbers<[2], [2], [1], [1], [0, 0, 0, 1, 1, 1], [0], [0]>} : vector<2x16x48xf32>, vector<2x8x48xf32>, vector<2x16x8xf32> -> vector<2x16x8xf32>
    "tpu.trace_stop"() : () -> ()
    %cst_11 = arith.constant 1.250000e-01 : f32
    %13 = vector.broadcast %cst_11 : f32 to vector<2x16x8xf32>
    %14 = arith.mulf %13, %12 : vector<2x16x8xf32>
    %cst_12 = arith.constant dense<0xFF800000> : vector<2x16xf32>
    %15 = vector.multi_reduction <maximumf>, %14, %cst_12 [2] : vector<2x16x8xf32> to vector<2x16xf32>
    %16 = vector.shape_cast %15 : vector<2x16xf32> to vector<2x16x1xf32>
    %17 = vector.broadcast %16 : vector<2x16x1xf32> to vector<2x16x8xf32>
    %18 = arith.subf %14, %17 : vector<2x16x8xf32>
    %19 = math.exp %18 : vector<2x16x8xf32>
    %cst_13 = arith.constant dense<0.000000e+00> : vector<2x16xf32>
    %20 = vector.multi_reduction <add>, %19, %cst_13 [2] : vector<2x16x8xf32> to vector<2x16xf32>
    %21 = vector.shape_cast %20 : vector<2x16xf32> to vector<2x16x1xf32>
    %22 = vector.broadcast %21 : vector<2x16x1xf32> to vector<2x16x8xf32>
    %23 = arith.divf %19, %22 : vector<2x16x8xf32>
    %c0_14 = arith.constant 0 : index
    %c0_15 = arith.constant 0 : index
    %c0_16 = arith.constant 0 : index
    %24 = vector.load %arg3[%c0_14, %c0_15, %c0_16] : memref<2x48x32xf32, #tpu.memory_space<vmem>>, vector<1x48x32xf32>
    %25 = vector.shape_cast %24 : vector<1x48x32xf32> to vector<48x32xf32>
    %cst_17 = arith.constant dense<0.000000e+00> : vector<16x32xf32>
    %26 = tpu.matmul %3, %25, %cst_17 {dimension_numbers = #tpu.dot_dimension_numbers<[1], [0], [0], [1], [0, 0, 1, 1], [], []>} : vector<16x48xf32>, vector<48x32xf32>, vector<16x32xf32> -> vector<16x32xf32>
    %27 = vector.shape_cast %26 : vector<16x32xf32> to vector<2x8x32xf32>
    "tpu.trace_start"() <{level = 10 : i32, message = "bnl,blk->bnk"}> : () -> ()
    %cst_18 = arith.constant dense<0.000000e+00> : vector<2x16x32xf32>
    %28 = tpu.matmul %23, %27, %cst_18 {dimension_numbers = #tpu.dot_dimension_numbers<[2], [1], [1], [2], [0, 0, 0, 1, 1, 2], [0], [0]>} : vector<2x16x8xf32>, vector<2x8x32xf32>, vector<2x16x32xf32> -> vector<2x16x32xf32>
    "tpu.trace_stop"() : () -> ()
    %29 = arith.addf %7, %28 : vector<2x16x32xf32>
    %c1 = arith.constant 1 : index
    %c0_19 = arith.constant 0 : index
    %c0_20 = arith.constant 0 : index
    %30 = vector.load %arg2[%c1, %c0_19, %c0_20] : memref<2x32x48xf32, #tpu.memory_space<vmem>>, vector<1x32x48xf32>
    %31 = vector.shape_cast %30 : vector<1x32x48xf32> to vector<32x48xf32>
    %cst_21 = arith.constant dense<0.000000e+00> : vector<32x48xf32>
    %32 = tpu.matmul %2, %31, %cst_21 {dimension_numbers = #tpu.dot_dimension_numbers<[1], [0], [0], [1], [0, 0, 1, 1], [], []>} : vector<32x32xf32>, vector<32x48xf32>, vector<32x48xf32> -> vector<32x48xf32>
    %33 = vector.shape_cast %32 : vector<32x48xf32> to vector<2x16x48xf32>
    "tpu.trace_start"() <{level = 10 : i32, message = "bnk,blk->bnl"}> : () -> ()
    %cst_22 = arith.constant dense<0.000000e+00> : vector<2x16x8xf32>
    %34 = tpu.matmul %33, %1, %cst_22 {dimension_numbers = #tpu.dot_dimension_numbers<[2], [2], [1], [1], [0, 0, 0, 1, 1, 1], [0], [0]>} : vector<2x16x48xf32>, vector<2x8x48xf32>, vector<2x16x8xf32> -> vector<2x16x8xf32>
    "tpu.trace_stop"() : () -> ()
    %cst_23 = arith.constant 1.250000e-01 : f32
    %35 = vector.broadcast %cst_23 : f32 to vector<2x16x8xf32>
    %36 = arith.mulf %35, %34 : vector<2x16x8xf32>
    %cst_24 = arith.constant dense<0xFF800000> : vector<2x16xf32>
    %37 = vector.multi_reduction <maximumf>, %36, %cst_24 [2] : vector<2x16x8xf32> to vector<2x16xf32>
    %38 = vector.shape_cast %37 : vector<2x16xf32> to vector<2x16x1xf32>
    %39 = vector.broadcast %38 : vector<2x16x1xf32> to vector<2x16x8xf32>
    %40 = arith.subf %36, %39 : vector<2x16x8xf32>
    %41 = math.exp %40 : vector<2x16x8xf32>
    %cst_25 = arith.constant dense<0.000000e+00> : vector<2x16xf32>
    %42 = vector.multi_reduction <add>, %41, %cst_25 [2] : vector<2x16x8xf32> to vector<2x16xf32>
    %43 = vector.shape_cast %42 : vector<2x16xf32> to vector<2x16x1xf32>
    %44 = vector.broadcast %43 : vector<2x16x1xf32> to vector<2x16x8xf32>
    %45 = arith.divf %41, %44 : vector<2x16x8xf32>
    %c1_26 = arith.constant 1 : index
    %c0_27 = arith.constant 0 : index
    %c0_28 = arith.constant 0 : index
    %46 = vector.load %arg3[%c1_26, %c0_27, %c0_28] : memref<2x48x32xf32, #tpu.memory_space<vmem>>, vector<1x48x32xf32>
    %47 = vector.shape_cast %46 : vector<1x48x32xf32> to vector<48x32xf32>
    %cst_29 = arith.constant dense<0.000000e+00> : vector<16x32xf32>
    %48 = tpu.matmul %3, %47, %cst_29 {dimension_numbers = #tpu.dot_dimension_numbers<[1], [0], [0], [1], [0, 0, 1, 1], [], []>} : vector<16x48xf32>, vector<48x32xf32>, vector<16x32xf32> -> vector<16x32xf32>
    %49 = vector.shape_cast %48 : vector<16x32xf32> to vector<2x8x32xf32>
    "tpu.trace_start"() <{level = 10 : i32, message = "bnl,blk->bnk"}> : () -> ()
    %cst_30 = arith.constant dense<0.000000e+00> : vector<2x16x32xf32>
    %50 = tpu.matmul %45, %49, %cst_30 {dimension_numbers = #tpu.dot_dimension_numbers<[2], [1], [1], [2], [0, 0, 0, 1, 1, 2], [0], [0]>} : vector<2x16x8xf32>, vector<2x8x32xf32>, vector<2x16x32xf32> -> vector<2x16x32xf32>
    "tpu.trace_stop"() : () -> ()
    %51 = arith.addf %29, %50 : vector<2x16x32xf32>
    %c0_31 = arith.constant 0 : index
    %c0_32 = arith.constant 0 : index
    %c0_33 = arith.constant 0 : index
    %52 = vector.load %arg5[%c0_31, %c0_32, %c0_33] : memref<2x16x32xf32, #tpu.memory_space<vmem>>, vector<2x16x32xf32>
    tpu.vector_store %arg5[%c0_31, %c0_32, %c0_33], %51 {strides = array<i32>} : memref<2x16x32xf32, #tpu.memory_space<vmem>>, vector<2x16x32xf32>,
    return
  }
}

</mosaic_0001>

<bundles_post_ra>
// kernel: tpu_custom_call.1
= control target key start
LH: loop header
LB: loop body
LE: loop exit
PB: predicated region body
PF: predicated region fallthrough
CT: control target
= control target key end

     0   :  { %vm42_vm0 = vcmask 261120   ;;  %vm140_vm1 = vcmask 392192   ;;  %s1648_s0 = inlined_call_operand.vmem [shape: f32[2,16,32], index: 0, kind: input, shape index: {}]   ;;  %s1649_s1 = inlined_call_operand.vmem [shape: f32[2,8,48], index: 1, kind: input, shape index: {}]   ;;  %s1650_s2 = inlined_call_operand.vmem [shape: f32[2,32,48], index: 2, kind: input, shape index: {}]   ;;  %s1651_s3 = inlined_call_operand.vmem [shape: f32[2,48,32], index: 3, kind: input, shape index: {}]   ;;  %s1652_s4 = inlined_call_operand.vmem [shape: f32[1,32], index: 4, kind: input, shape index: {}]   ;;  %s1653_s5 = inlined_call_operand.hbm [shape: f32[2,16,32], index: 5, kind: output, shape index: {}]  }
   0x1   :  { %v41_v0 = vld [vmem:[%s1650_s2 + $0x18] sm:$0xff]  ;;  %v40_v1 = vld [vmem:[%s1650_s2 + $0x10] sm:$0xff]  ;;  %v1469_v2 = vld [vmem:[%s1648_s0] sm:$0xff] }
   0x2   :  { %1272 = vmatprep.subr.mxu0 %v41_v0  ;;  %v39_v3 = vld [vmem:[%s1650_s2 + $0x8] sm:$0xff]  ;;  %1280 = vmatprep.mubr.msk.f32.mxu0 %vm42_vm0, %v1469_v2  ;;  %v1479_v4 = vld [vmem:[%s1649_s1] sm:$0xff] }
   0x3   :  { %1273 = vmatpush3.msra.mxu0 %v41_v0  ;;  %1286 = vmatprep.subr.msk.mxu1 %vm140_vm1, %v1479_v4 }
   0x4   :  { %1274 = vmatprep.subr.mxu0 %v40_v1 }
   0x5   :  { %10 = vsyncpa [#allocation3], 0  ;;  %1275 = vmatpush3.msra.mxu0 %v40_v1  ;;  %v38_v5 = vld [vmem:[%s1650_s2] sm:$0xff]  ;;  %1287 = vmatpush3.xpose.msk.msra.mxu1 %vm140_vm1, %v1479_v4  ;;  %v1491_v6 = vld [vmem:[%s1648_s0 + $0x8] sm:$0xff]  ;;  %vm313_vm2 = vcmask 64512  }
   0x6   :  { %1276 = vmatprep.subr.mxu0 %v39_v3  ;;  %v1496_v7 = vld [vmem:[%s1648_s0 + $0x10] sm:$0xff]  ;;  %v1505_v8 = vld [vmem:[%s1648_s0 + $0x18] sm:$0xff]  ;;  %v1514_v9 = vld [vmem:[%s1649_s1 + $0x8] sm:$0xff] }
   0x7   :  { %1277 = vmatpush3.msra.mxu0 %v39_v3  ;;  %1291 = vmatprep.subr.msk.mxu1 %vm140_vm1, %v1514_v9  ;;  %v363_v14 = vld [vmem:[%s1651_s3 + $0x28] sm:$0xff]  ;;  %v362_v15 = vld [vmem:[%s1651_s3 + $0x20] sm:$0xff]  ;;  %v361_v16 = vld [vmem:[%s1651_s3 + $0x18] sm:$0xff] }
   0x8   :  { %1278 = vmatprep.subr.mxu0 %v38_v5  ;;  %v360_v17 = vld [vmem:[%s1651_s3 + $0x10] sm:$0xff]  ;;  %v359_v18 = vld [vmem:[%s1651_s3 + $0x8] sm:$0xff]  ;;  %v358_v19 = vld [vmem:[%s1651_s3] sm:$0xff] }
   0x9   :  { %1279 = vmatpush3.msra.mxu0 %v38_v5  ;;  %v1193_v0 = vld [vmem:[%s1650_s2 + $0x38] sm:$0xff]  ;;  %v1192_v5 = vld [vmem:[%s1650_s2 + $0x30] sm:$0xff] }
   0xa   :  { %1281 = vmatmul.mubr.msk.f32.vlgmr.msra.gmra.mxu0 %vm42_vm0, %v1491_v6  ;;  %1296 = vmatprep.subr.mxu0 %v363_v14 }
   0xb   :  { %1283 = vmatprep.mubr.msk.f32.mxu0 %vm42_vm0, %v1496_v7  ;;  %1297 = vmatpush3.msra.mxu0 %v363_v14 }
   0xc   :  { %1298 = vmatprep.subr.mxu0 %v362_v15 }
   0xd   :  { %1299 = vmatpush3.msra.mxu0 %v362_v15 }
   0xe   :  { %1284 = vmatmul.mubr.msk.f32.gmra.mxu0 %vm42_vm0, %v1505_v8  ;;  %1300 = vmatprep.subr.mxu0 %v361_v16 }
   0xf   :  { %1308 = vmatprep.mubr.msk.f32.mxu0 %vm140_vm1, %v1479_v4  ;;  %1301 = vmatpush3.msra.mxu0 %v361_v16 }
  0x10   :  { %1302 = vmatprep.subr.mxu0 %v360_v17 }
  0x11   :  { %1303 = vmatpush3.msra.mxu0 %v360_v17 }
  0x12   :  { %1304 = vmatprep.subr.mxu0 %v359_v18 }
  0x13   :  { %1305 = vmatpush3.msra.mxu0 %v359_v18 }
  0x14   :  { %1306 = vmatprep.subr.mxu0 %v358_v19 }
  0x15   :  { %1307 = vmatpush3.msra.mxu0 %v358_v19 }
  0x16   :  { %1309 = vmatmul.mubr.msk.f32.vlgmr.msra.gmra.mxu0 %vm140_vm1, %v1514_v9  ;;  %1335 = vmatprep.subr.msk.mxu0 %vm140_vm1, %v1479_v4 }
  0x17   :  { %1336 = vmatpush3.xpose.msk.msra.mxu0 %vm140_vm1, %v1479_v4 }
  0x18   :  { %1340 = vmatprep.subr.msk.mxu0 %vm140_vm1, %v1514_v9 }
  0xca   :  { %v1282_v10 = vpop.f32.mrf.mxu0 }
  0xcc   :  { %v121_v11 = vpop.f32.mrf.mxu0 }
  0xcd   :  { %1288 = vmatprep.mubr.msk.f32.mxu1 %vm140_vm1, %v121_v11  ;;  %v1190_v11 = vld [vmem:[%s1650_s2 + $0x20] sm:$0xff] }
  0xce   :  { %v1285_v12 = vpop.f32.mrf.mxu0  ;;  %1289 = vmatmul.mubr.msk.f32.vlgmr.msra.gmra.mxu1 %vm140_vm1, %v1282_v10  ;;  %v1191_v10 = vld [vmem:[%s1650_s2 + $0x28] sm:$0xff] }
  0xcf   :  { %1292 = vmatpush3.xpose.msk.msra.mxu1 %vm140_vm1, %v1514_v9 }
  0xd0   :  { %v131_v13 = vpop.f32.mrf.mxu0 }
  0xd1   :  { %1293 = vmatprep.mubr.msk.f32.mxu1 %vm140_vm1, %v131_v13 }
  0xd2   :  { %1294 = vmatmul.mubr.msk.f32.vlgmr.msra.gmra.mxu1 %vm140_vm1, %v1285_v12 }
  0xd6   :  { %v1310_v52 = vpop.f32.mrf.mxu0 }
  0xd8   :  { %v430_v53 = vpop.f32.mrf.mxu0 }
  0xd9   :  { %1311 = vmatprep.subr.mxu1 %v430_v53 }
  0xda   :  { %1312 = vmatpush3.msra.mxu1 %v430_v53 }
  0xdb   :  { %1316 = vmatprep.subr.mxu1 %v1310_v52 }
 0x18e   :  { %v1290_v20 = vpop.f32.mrf.mxu1 }
 0x18f   :  { %v310_v24 = vmul.f32 0.125, %v1290_v20  ;;  %v1208_v20 = vld [vmem:[%s1651_s3 + $0x50] sm:$0xff] }
 0x190   :  { %v216_v21 = vpop.f32.mrf.mxu1 }
 0x191   :  { %v309_v22 = vmul.f32 0.125, %v216_v21  ;;  %v317_v29 = vsel %vm313_vm2, %v310_v24, -inf  ;;  %v1207_v21 = vld [vmem:[%s1651_s3 + $0x48] sm:$0xff] }
 0x192   :  { %v1295_v23 = vpop.f32.mrf.mxu1 }
 0x193   :  { %v314_v25 = vsel %vm313_vm2, %v309_v22, -inf  ;;  %v312_v28 = vmul.f32 0.125, %v1295_v23  ;;  %v1205_v23 = vld [vmem:[%s1651_s3 + $0x38] sm:$0xff] }
 0x194   :  { %315 = vmax.xlane.f32.xlu0 %v314_v25  ;;  %v300_v26 = vpop.f32.mrf.mxu1 }
 0x195   :  { %v311_v27 = vmul.f32 0.125, %v300_v26  ;;  %v323_v31 = vsel %vm313_vm2, %v312_v28, -inf }
 0x197   :  { %v320_v30 = vsel %vm313_vm2, %v311_v27, -inf }
 0x198   :  { %318 = vmax.xlane.f32.xlu0 %v317_v29  ;;  %321 = vmax.xlane.f32.xlu1 %v320_v30 }
 0x19c   :  { %324 = vmax.xlane.f32.xlu1 %v323_v31 }
 0x21d   :  { %v316_v32 = vpop.xlane.xlu0 %315 }
 0x21e   :  { %v326_v33 = vsub.f32 %v309_v22, %v316_v32  ;;  %v1206_v22 = vld [vmem:[%s1651_s3 + $0x40] sm:$0xff] }
 0x220   :  { %v330_v34 = vmul.f32 1.442695, %v326_v33 }
 0x221   :  { %v319_v35 = vpop.xlane.xlu0 %318  ;;  %v322_v36 = vpop.xlane.xlu1 %321 }
 0x222   :  { %1373 = vpow2.f32 %v330_v34  ;;  %v327_v37 = vsub.f32 %v310_v24, %v319_v35  ;;  %v328_v38 = vsub.f32 %v311_v27, %v322_v36  ;;  %v1204_v24 = vld [vmem:[%s1651_s3 + $0x30] sm:$0xff] }
 0x224   :  { %v332_v39 = vmul.f32 1.442695, %v327_v37  ;;  %v334_v40 = vmul.f32 1.442695, %v328_v38 }
 0x225   :  { %v325_v41 = vpop.xlane.xlu1 %324 }
 0x226   :  { %1375 = vpow2.f32 %v332_v39  ;;  %v329_v42 = vsub.f32 %v312_v28, %v325_v41 }
 0x227   :  { %1377 = vpow2.f32 %v334_v40 }
 0x228   :  { %v336_v43 = vmul.f32 1.442695, %v329_v42 }
 0x22a   :  { %1379 = vpow2.f32 %v336_v43 }
 0x22f   :  { %v1374_v44 = vpop.eup %1373 }
 0x230   :  { %v338_v45 = vsel %vm313_vm2, %v1374_v44, 0.0 }
 0x231   :  { %339 = vadd.xlane.f32.xlu0 %v338_v45 }
 0x233   :  { %v1376_v46 = vpop.eup %1375 }
 0x234   :  { %v1378_v47 = vpop.eup %1377  ;;  %v341_v48 = vsel %vm313_vm2, %v1376_v46, 0.0 }
 0x235   :  { %342 = vadd.xlane.f32.xlu1 %v341_v48  ;;  %v344_v49 = vsel %vm313_vm2, %v1378_v47, 0.0 }
 0x236   :  { %345 = vadd.xlane.f32.xlu0 %v344_v49 }
 0x237   :  { %v1380_v50 = vpop.eup %1379 }
 0x238   :  { %v347_v51 = vsel %vm313_vm2, %v1380_v50, 0.0 }
 0x239   :  { %348 = vadd.xlane.f32.xlu1 %v347_v51 }
 0x2ba   :  { %v340_v54 = vpop.xlane.xlu0 %339 }
 0x2bb   :  { %1381 = vrcp.f32 %v340_v54 }
 0x2be   :  { %v343_v55 = vpop.xlane.xlu1 %342 }
 0x2bf   :  { %v346_v56 = vpop.xlane.xlu0 %345  ;;  %1383 = vrcp.f32 %v343_v55 }
 0x2c0   :  { %1385 = vrcp.f32 %v346_v56 }
 0x2c2   :  { %v349_v57 = vpop.xlane.xlu1 %348 }
 0x2c3   :  { %1387 = vrcp.f32 %v349_v57 }
 0x2c8   :  { %v1382_v58 = vpop.eup %1381 }
 0x2c9   :  { %v351_v59 = vmul.f32 %v1382_v58, %v1374_v44 }
 0x2cb   :  { %1313 = vmatprep.mubr.msk.f32.mxu1 %vm313_vm2, %v351_v59 }
 0x2cc   :  { %v1384_v60 = vpop.eup %1383 }
 0x2cd   :  { %v1386_v61 = vpop.eup %1385  ;;  %v353_v62 = vmul.f32 %v1384_v60, %v1376_v46 }
 0x2ce   :  { %v355_v63 = vmul.f32 %v1386_v61, %v1378_v47 }
 0x2cf   :  { %1314 = vmatmul.mubr.msk.f32.vlgmr.msra.gmra.mxu1 %vm313_vm2, %v353_v62 }
 0x2d0   :  { %v1388_v1 = vpop.eup %1387  ;;  %1317 = vmatpush3.msra.mxu1 %v1310_v52  ;;  %1318 = vmatprep.mubr.msk.f32.mxu1 %vm313_vm2, %v355_v63 }
 0x2d1   :  { %1321 = vmatprep.subr.mxu1 %v1193_v0  ;;  %v357_v3 = vmul.f32 %v1388_v1, %v1380_v50 }
 0x2d3   :  { %1319 = vmatmul.mubr.msk.f32.vlgmr.msra.gmra.mxu1 %vm313_vm2, %v357_v3 }
 0x2d4   :  { %1322 = vmatpush3.msra.mxu1 %v1193_v0  ;;  %1329 = vmatprep.mubr.msk.f32.mxu1 %vm42_vm0, %v1469_v2 }
 0x2d5   :  { %1323 = vmatprep.subr.mxu1 %v1192_v5 }
 0x2d6   :  { %1324 = vmatpush3.msra.mxu1 %v1192_v5 }
 0x2d7   :  { %1325 = vmatprep.subr.mxu1 %v1191_v10 }
 0x2d8   :  { %1326 = vmatpush3.msra.mxu1 %v1191_v10 }
 0x2d9   :  { %1327 = vmatprep.subr.mxu1 %v1190_v11 }
 0x2da   :  { %1328 = vmatpush3.msra.mxu1 %v1190_v11 }
 0x2db   :  { %1330 = vmatmul.mubr.msk.f32.vlgmr.msra.gmra.mxu1 %vm42_vm0, %v1491_v6 }
 0x2dc   :  { %1332 = vmatprep.mubr.msk.f32.mxu1 %vm42_vm0, %v1496_v7 }
 0x2df   :  { %1333 = vmatmul.mubr.msk.f32.gmra.mxu1 %vm42_vm0, %v1505_v8 }
 0x2e0   :  { %1357 = vmatprep.mubr.msk.f32.mxu1 %vm140_vm1, %v1479_v4  ;;  %v1209_v4 = vld [vmem:[%s1651_s3 + $0x58] sm:$0xff] }
 0x2e1   :  { %1345 = vmatprep.subr.mxu1 %v1209_v4 }
 0x2e2   :  { %1346 = vmatpush3.msra.mxu1 %v1209_v4 }
 0x2e3   :  { %1347 = vmatprep.subr.mxu1 %v1208_v20 }
 0x2e4   :  { %1348 = vmatpush3.msra.mxu1 %v1208_v20 }
 0x2e5   :  { %1349 = vmatprep.subr.mxu1 %v1207_v21 }
 0x2e6   :  { %1350 = vmatpush3.msra.mxu1 %v1207_v21 }
 0x2e7   :  { %1351 = vmatprep.subr.mxu1 %v1206_v22 }
 0x2e8   :  { %1352 = vmatpush3.msra.mxu1 %v1206_v22 }
 0x2e9   :  { %1353 = vmatprep.subr.mxu1 %v1205_v23 }
 0x2ea   :  { %1354 = vmatpush3.msra.mxu1 %v1205_v23 }
 0x2eb   :  { %1355 = vmatprep.subr.mxu1 %v1204_v24 }
 0x2ec   :  { %1356 = vmatpush3.msra.mxu1 %v1204_v24 }
 0x2ed   :  { %1358 = vmatmul.mubr.msk.f32.vlgmr.msra.gmra.mxu1 %vm140_vm1, %v1514_v9 }
 0x38f   :  { %v1584_v12 = vpop.f32.mrf.mxu1 }
 0x391   :  { %v1586_v13 = vpop.f32.mrf.mxu1 }
 0x393   :  { %v1588_v14 = vpop.f32.mrf.mxu1 }
 0x395   :  { %v1590_v15 = vpop.f32.mrf.mxu1 }
 0x39b   :  { %v1331_v16 = vpop.f32.mrf.mxu1 }
 0x39d   :  { %v676_v17 = vpop.f32.mrf.mxu1 }
 0x39e   :  { %1337 = vmatprep.mubr.msk.f32.mxu0 %vm140_vm1, %v676_v17 }
 0x39f   :  { %v1334_v18 = vpop.f32.mrf.mxu1  ;;  %1338 = vmatmul.mubr.msk.f32.vlgmr.msra.gmra.mxu0 %vm140_vm1, %v1331_v16  ;;  %v1173_v16 = vld [vmem:[%s1652_s4] ss:$0 sm:$0xff]  ;;  %s1427_s4 = smov [#allocation2]  }
 0x3a0   :  { %1341 = vmatpush3.xpose.msk.msra.mxu0 %vm140_vm1, %v1514_v9  ;;  %v35_v17 = vadd.f32 %v1173_v16, %v1491_v6  ;;  %v37_v4 = vadd.f32 %v1173_v16, %v1505_v8  ;;  %v36_v22 = vadd.f32 %v1173_v16, %v1496_v7  ;;  %s1162_s16 = sshll.u32 %s1427_s4, 4  ;;  %s1163_s16 = int_to_ptr.vmem [resolvable:$true] %s1162_s16 }
 0x3a1   :  { %v686_v19 = vpop.f32.mrf.mxu1  ;;  %s1405_s17 = scalar_lea.vmem %s1163_s16, 512  ;;  %p1410_p1 = scmp.lt.s32.totalorder %s1163_s16, %s1163_s16 }
 0x3a2   :  { %1342 = vmatprep.mubr.msk.f32.mxu0 %vm140_vm1, %v686_v19  ;;  %v602_v19 = vadd.f32 %v1584_v12, %v35_v17  ;;  %p1406_p0 = scmp.ne.s32.totalorder %s1163_s16, %s1405_s17  ;;  %p1411_p2 = scmp.lt.s32.totalorder %s1405_s17, %s1405_s17 }
 0x3a3   :  { %1343 = vmatmul.mubr.msk.f32.vlgmr.msra.gmra.mxu0 %vm140_vm1, %v1334_v18  ;;  %v34_v18 = vadd.f32 %v1173_v16, %v1469_v2  ;;  %v603_v2 = vadd.f32 %v1590_v15, %v36_v22 }
 0x3a4   :  { %p1412_p3 = por %p1411_p2, %p1410_p1 }
 0x3a5   :  { %v601_v21 = vadd.f32 %v1586_v13, %v34_v18 }
 0x3a6   :  { %p1413_p4 = pnand %p1412_p3, %p1406_p0 }
 0x3ad   :  { %v1359_v56 = vpop.f32.mrf.mxu1 }
 0x3af   :  { %v978_v57 = vpop.f32.mrf.mxu1 }
 0x3b0   :  { %1360 = vmatprep.subr.mxu0 %v978_v57 }
 0x3b1   :  { %1361 = vmatpush3.msra.mxu0 %v978_v57 }
 0x3b2   :  { %1365 = vmatprep.subr.mxu0 %v1359_v56 }
 0x45f   :  { %v1339_v25 = vpop.f32.mrf.mxu0 }
 0x460   :  { %v858_v26 = vmul.f32 0.125, %v1339_v25  ;;  %v604_v25 = vadd.f32 %v1588_v14, %v37_v4 }
 0x461   :  { %v767_v27 = vpop.f32.mrf.mxu0 }
 0x462   :  { %v857_v28 = vmul.f32 0.125, %v767_v27  ;;  %v864_v29 = vsel %vm313_vm2, %v858_v26, -inf }
 0x463   :  { %865 = vmax.xlane.f32.xlu1 %v864_v29  ;;  %v1344_v30 = vpop.f32.mrf.mxu0 }
 0x464   :  { %v860_v31 = vmul.f32 0.125, %v1344_v30  ;;  %v861_v32 = vsel %vm313_vm2, %v857_v28, -inf }
 0x465   :  { %862 = vmax.xlane.f32.xlu0 %v861_v32  ;;  %v848_v33 = vpop.f32.mrf.mxu0 }
 0x466   :  { %v859_v34 = vmul.f32 0.125, %v848_v33  ;;  %v870_v35 = vsel %vm313_vm2, %v860_v31, -inf }
 0x467   :  { %871 = vmax.xlane.f32.xlu1 %v870_v35 }
 0x468   :  { %v867_v36 = vsel %vm313_vm2, %v859_v34, -inf }
 0x469   :  { %868 = vmax.xlane.f32.xlu0 %v867_v36 }
 0x4ec   :  { %v866_v9 = vpop.xlane.xlu1 %865 }
 0x4ed   :  { %v874_v37 = vsub.f32 %v858_v26, %v866_v9 }
 0x4ee   :  { %v863_v38 = vpop.xlane.xlu0 %862 }
 0x4ef   :  { %v879_v39 = vmul.f32 1.442695, %v874_v37  ;;  %v873_v40 = vsub.f32 %v857_v28, %v863_v38 }
 0x4f0   :  { %v872_v41 = vpop.xlane.xlu1 %871 }
 0x4f1   :  { %1389 = vpow2.f32 %v879_v39  ;;  %v877_v42 = vmul.f32 1.442695, %v873_v40  ;;  %v876_v43 = vsub.f32 %v860_v31, %v872_v41 }
 0x4f2   :  { %v869_v44 = vpop.xlane.xlu0 %868 }
 0x4f3   :  { %1391 = vpow2.f32 %v877_v42  ;;  %v883_v45 = vmul.f32 1.442695, %v876_v43  ;;  %v875_v46 = vsub.f32 %v859_v34, %v869_v44 }
 0x4f5   :  { %1393 = vpow2.f32 %v883_v45  ;;  %v881_v47 = vmul.f32 1.442695, %v875_v46 }
 0x4f7   :  { %1395 = vpow2.f32 %v881_v47 }
 0x4fe   :  { %v1390_v48 = vpop.eup %1389 }
 0x4ff   :  { %v888_v49 = vsel %vm313_vm2, %v1390_v48, 0.0 }
 0x500   :  { %v1392_v50 = vpop.eup %1391  ;;  %889 = vadd.xlane.f32.xlu1 %v888_v49 }
 0x501   :  { %v885_v51 = vsel %vm313_vm2, %v1392_v50, 0.0 }
 0x502   :  { %v1394_v52 = vpop.eup %1393  ;;  %886 = vadd.xlane.f32.xlu0 %v885_v51 }
 0x503   :  { %v894_v53 = vsel %vm313_vm2, %v1394_v52, 0.0 }
 0x504   :  { %v1396_v54 = vpop.eup %1395  ;;  %895 = vadd.xlane.f32.xlu1 %v894_v53 }
 0x505   :  { %v891_v55 = vsel %vm313_vm2, %v1396_v54, 0.0 }
 0x506   :  { %892 = vadd.xlane.f32.xlu0 %v891_v55 }
 0x589   :  { %v890_v58 = vpop.xlane.xlu1 %889 }
 0x58a   :  { %1397 = vrcp.f32 %v890_v58 }
 0x58b   :  { %v887_v59 = vpop.xlane.xlu0 %886 }
 0x58c   :  { %1399 = vrcp.f32 %v887_v59 }
 0x58d   :  { %v896_v60 = vpop.xlane.xlu1 %895 }
 0x58e   :  { %1401 = vrcp.f32 %v896_v60 }
 0x58f   :  { %v893_v61 = vpop.xlane.xlu0 %892 }
 0x590   :  { %1403 = vrcp.f32 %v893_v61 }
 0x597   :  { %v1398_v62 = vpop.eup %1397 }
 0x598   :  { %v900_v1 = vmul.f32 %v1398_v62, %v1390_v48 }
 0x599   :  { %v1400_v63 = vpop.eup %1399 }
 0x59a   :  { %v898_v0 = vmul.f32 %v1400_v63, %v1392_v50 }
 0x59b   :  { %v1402_v3 = vpop.eup %1401 }
 0x59c   :  { %1362 = vmatprep.mubr.msk.f32.mxu0 %vm313_vm2, %v898_v0  ;;  %v904_v11 = vmul.f32 %v1402_v3, %v1394_v52 }
 0x59d   :  { %v1404_v5 = vpop.eup %1403  ;;  %1363 = vmatmul.mubr.msk.f32.vlgmr.msra.gmra.mxu0 %vm313_vm2, %v900_v1 }
 0x59e   :  { %1366 = vmatpush3.msra.mxu0 %v1359_v56  ;;  %v902_v10 = vmul.f32 %v1404_v5, %v1396_v54 }
 0x5a0   :  { %1367 = vmatprep.mubr.msk.f32.mxu0 %vm313_vm2, %v902_v10 }
 0x5a1   :  { %1368 = vmatmul.mubr.msk.f32.vlgmr.msra.gmra.mxu0 %vm313_vm2, %v904_v11 }
 0x65d   :  { %v1364_v20 = vpop.f32.mrf.mxu0 }
 0x65e   :  { %v1150_v23 = vadd.f32 %v1364_v20, %v602_v19 }
 0x65f   :  { %v1059_v24 = vpop.f32.mrf.mxu0 }
 0x660   :  { %1154 = vst.msk [vmem:[#allocation2 + $0x8] sm:$0xff] %vm42_vm0, %v1150_v23  ;;  %v1149_v26 = vadd.f32 %v1059_v24, %v601_v21 }
 0x661   :  { %v1369_v27 = vpop.f32.mrf.mxu0 }
 0x662   :  { %1153 = vst.msk [vmem:[#allocation2] sm:$0xff] %vm42_vm0, %v1149_v26  ;;  %v1152_v6 = vadd.f32 %v1369_v27, %v604_v25 }
 0x663   :  { %v1140_v8 = vpop.f32.mrf.mxu0 }
 0x664   :  { %1156 = vst.msk [vmem:[#allocation2 + $0x18] sm:$0xff] %vm42_vm0, %v1152_v6  ;;  %v1151_v12 = vadd.f32 %v1140_v8, %v603_v2 }
 0x666   :  { %1155 = vst.msk [vmem:[#allocation2 + $0x10] sm:$0xff] %vm42_vm0, %v1151_v12 }
 0x667   :  { %1416 = shalt.err (!%p1413_p4)
}
 0x668   :  { %s1428_s18 = smov 128   ;;  %s1429_s19 = smov 8  }
 0x669   :  { %1168 = dma.vmem_to_hbm [thread:$0]  %s1163_s16, 512, %s1653_s5, [#allocation3], %s1428_s18, %s1428_s18, %s1429_s19  }
 0x66a   :  { %1425 = dma.done.wait [#allocation3], 512  }
 0x66b   :  { %1426 = vsyncadd [#allocation3], 4294966784 }
 0x66c   :  { %1172 = vsyncpa [#allocation3], 1 }

</bundles_post_ra>
